<compile_context>
chip_gen: v6e
topology: v6e:2x2x1
jax: 0.10.0
libtpu: 0.0.40
codegen_flags: <defaults>
</compile_context>

<pallas_src>
import jax
import jax.numpy as jnp
from jax import lax
from jax.experimental import pallas as pl
from jax.experimental.pallas import tpu as pltpu


def _round_up(x, m):
    return ((x + m - 1) // m) * m


# ---------------------------------------------------------------------------
# Kernel factory: fused masked mean-pooling over time + out_proj linear.
# ---------------------------------------------------------------------------
def _make_kernel(t_total: int, t_tile: int, need_tail: bool, masked: bool, unroll: int):
    def _accumulate(feats_ref, w_ref, acc_ref, t, guard_oob: bool):
        # Row-wise accumulation with the accumulator carried in registers:
        # live state is (B_TILE, C) f32 + one feature row — no big temporaries.
        def body(i, acc):
            row = feats_ref[i].astype(jnp.float32)          # (B_TILE, C), upcast after load
            if masked:
                row = row * w_ref[i]                        # (B_TILE, 1) 0/1 lane-broadcast
            if guard_oob:
                # Last time block only: drop rows past T (select, not a 0-mul,
                # so out-of-bounds garbage / NaN never pollutes the accumulator).
                row = jnp.where(i + t * t_tile < t_total, row, 0.0)
            return acc + row

        acc_ref[...] = lax.fori_loop(0, t_tile, body, acc_ref[...], unroll=unroll)

    def kernel(*refs):
        if masked:
            feats_ref, w_ref, inv_ref, wout_ref, b_ref, out_ref, acc_ref = refs
        else:
            feats_ref, wout_ref, b_ref, out_ref, acc_ref = refs
            w_ref = None
            inv_ref = None

        t = pl.program_id(1)
        last = pl.num_programs(1) - 1

        @pl.when(t == 0)
        def _init():
            acc_ref[...] = jnp.zeros_like(acc_ref)

        if need_tail:
            # Interior blocks: no tail select at all.
            @pl.when(t < last)
            def _interior():
                _accumulate(feats_ref, w_ref, acc_ref, t, guard_oob=False)

            # Tail block: scalar-predicate select per row.
            @pl.when(t == last)
            def _tail():
                _accumulate(feats_ref, w_ref, acc_ref, t, guard_oob=True)
        else:
            _accumulate(feats_ref, w_ref, acc_ref, t, guard_oob=False)

        @pl.when(t == last)
        def _finalize():
            if masked:
                pooled = acc_ref[...] * inv_ref[...]        # per-row 1/count (inf -> NaN matches torch)
            else:
                pooled = acc_ref[...] * (1.0 / t_total)     # plain mean over time
            out_ref[...] = (
                jnp.dot(pooled, wout_ref[...], preferred_element_type=jnp.float32)
                + b_ref[...]
            ).astype(out_ref.dtype)

    return kernel


# ---------------------------------------------------------------------------
# Wrapper (mask -> 0/1 weights + inverse counts, tiling, pallas_call).
# ---------------------------------------------------------------------------
def wav2vec2_seq_class_head(features_tbc, padding_mask, params, *, t_tile=None):
    """features_tbc: (T, B, C) f32/bf16, padding_mask: (B, T) bool (True=padded) or None."""
    T, B, C = features_tbc.shape
    w_out = params["out_proj_w"]          # (O, C)  torch nn.Linear convention
    b_out = params["out_proj_b"]          # (O,)
    O = w_out.shape[0]
    masked = padding_mask is not None

    # Dropout layers are identity at inference; the `dense` branch result is
    # dead code in the reference forward, so it does not affect the output.

    wout_t = jnp.transpose(w_out).astype(jnp.float32)       # (C, O) small
    bias = b_out.reshape(1, O).astype(jnp.float32)           # (1, O)

    # ---- tiling (padded-VMEM-footprint aware) ------------------------------
    itemsize = jnp.dtype(features_tbc.dtype).itemsize
    sub_pack = {4: 8, 2: 16, 1: 32}.get(itemsize, 8)          # sublane packing of the input dtype

    # Split the batch into 2 tiles when that keeps B_TILE fully sublane-packed:
    # free on single-core chips (same block bytes / step count), and lets the
    # "parallel" batch axis shard across both TensorCores on multi-core chips.
    if B >= 2 * sub_pack and B % (2 * sub_pack) == 0:
        b_tile = B // 2
    else:
        b_tile = B
    nb = B // b_tile

    c_pad = _round_up(C, 128)
    b_pad = _round_up(max(b_tile, 1), sub_pack)
    feat_row_bytes = b_pad * c_pad * itemsize                 # per time-row, padded
    mask_row_bytes = 8 * 128 * 4 if masked else 0             # (B_TILE,1) f32 tile pads to (8,128)
    row_bytes = feat_row_bytes + mask_row_bytes

    if t_tile is None:
        target_bytes = 6 * 1024 * 1024                        # ~6 MiB per buffer (x2 double-buffered)
        t_tile = max(1, target_bytes // row_bytes)
        if t_tile >= 8:
            t_tile = (t_tile // 8) * 8
    t_tile = int(max(1, min(int(t_tile), T)))
    nt = pl.cdiv(T, t_tile)
    need_tail = (T % t_tile) != 0
    unroll = int(max(1, min(8, t_tile)))

    block_bytes = t_tile * row_bytes
    # Cover 2x double-buffered blocks + params + accumulator with headroom;
    # >= 32 MiB lifts v5e's 16 MiB scoped default while staying under v7x's
    # per-core physical VMEM for the block sizes chosen above.
    vmem_limit = int(min(128 * 1024 * 1024,
                         max(32 * 1024 * 1024, 2 * block_bytes + 8 * 1024 * 1024)))

    kernel = _make_kernel(T, t_tile, need_tail, masked, unroll)

    feats_spec = pl.BlockSpec((t_tile, b_tile, C), lambda b, t: (t, b, 0))
    wout_spec = pl.BlockSpec((C, O), lambda b, t: (0, 0))
    bias_spec = pl.BlockSpec((1, O), lambda b, t: (0, 0))
    out_spec = pl.BlockSpec((b_tile, O), lambda b, t: (b, 0))

    bytes_accessed = T * B * C * itemsize + C * O * 4 + 2 * B * O * 4

    if masked:
        valid = (~padding_mask).astype(jnp.float32)           # (B, T) 1 = valid frame
        counts = valid.sum(axis=1, keepdims=True)             # (B, 1)
        # counts == 0 (fully padded row) -> inf -> NaN output, matching torch.
        inv_counts = 1.0 / counts                             # (B, 1)
        w3 = jnp.transpose(valid)[:, :, None]                 # (T, B, 1) 0/1 mask
        in_specs = [
            feats_spec,
            pl.BlockSpec((t_tile, b_tile, 1), lambda b, t: (t, b, 0)),
            pl.BlockSpec((b_tile, 1), lambda b, t: (b, 0)),
            wout_spec,
            bias_spec,
        ]
        args = (features_tbc, w3, inv_counts, wout_t, bias)
        bytes_accessed += T * B * 4 + B * 4
    else:
        in_specs = [feats_spec, wout_spec, bias_spec]
        args = (features_tbc, wout_t, bias)

    cost = pl.CostEstimate(flops=int(2 * T * B * C + 2 * B * C * O),
                           transcendentals=0,
                           bytes_accessed=int(bytes_accessed))

    return pl.pallas_call(
        kernel,
        out_shape=jax.ShapeDtypeStruct((B, O), jnp.float32),
        grid_spec=pltpu.PrefetchScalarGridSpec(
            num_scalar_prefetch=0,
            grid=(nb, nt),                       # batch tiles parallel, time = trailing reduction
            in_specs=in_specs,
            out_specs=out_spec,
            scratch_shapes=[pltpu.VMEM((b_tile, C), jnp.float32)],
        ),
        compiler_params=pltpu.CompilerParams(
            dimension_semantics=("parallel", "arbitrary"),
            vmem_limit_bytes=vmem_limit),
        cost_estimate=cost,
    )(*args)


# ---------------------------------------------------------------------------
# Pure-JAX reference (mirrors the PyTorch forward exactly).
# ---------------------------------------------------------------------------
def _ref_forward(features_tbc, padding_mask, params):
    feats = features_tbc.astype(jnp.float32)
    if padding_mask is None:
        pooled = feats.mean(0)
    else:
        src_masks = (~padding_mask).T.astype(feats.dtype)            # (T, B)
        pooled = (
            feats / src_masks.sum(0)[None, :, None] * src_masks[:, :, None]
        ).sum(0)                                                     # (B, C)
    return pooled @ params["out_proj_w"].T + params["out_proj_b"]


# ---------------------------------------------------------------------------
# Deterministic parameter init (module __init__ shapes; synthetic, no checkpoint).
# ---------------------------------------------------------------------------
def init_params(key, input_dim, inner_dim, num_outs):
    k1, k2, k3, k4 = jax.random.split(key, 4)
    scale_d = 1.0 / jnp.sqrt(input_dim)
    scale_o = 1.0 / jnp.sqrt(inner_dim if inner_dim > 0 else input_dim)
    return {
        # dense branch parameters exist in the module but its output is dead code
        "dense_w": jax.random.uniform(k1, (inner_dim, input_dim), jnp.float32,
                                      -scale_d, scale_d),
        "dense_b": jax.random.uniform(k2, (inner_dim,), jnp.float32,
                                      -scale_d, scale_d),
        "out_proj_w": jax.random.uniform(
            k3, (num_outs, inner_dim if inner_dim > 0 else input_dim),
            jnp.float32, -scale_o, scale_o),
        "out_proj_b": jax.random.uniform(k4, (num_outs,), jnp.float32,
                                         -scale_o, scale_o),
    }


if __name__ == "__main__":
    # Small shapes consistent with the module: seq-first features.
    T, B, C = 8, 2, 32          # time, batch, input_dim
    inner_dim = 32              # == input_dim so the (dead) dense branch is well-formed
    num_outs = 8

    key = jax.random.PRNGKey(0)
    k_feat, k_param = jax.random.split(key)

    features = jax.random.normal(k_feat, (T, B, C), jnp.float32)   # (T, B, C)
    lengths = jnp.array([8, 5], jnp.int32)                         # valid frames per batch
    padding_mask = jnp.arange(T)[None, :] >= lengths[:, None]      # (B, T) True = padded

    params = init_params(k_param, C, inner_dim, num_outs)

    # 1) masked, default tiling (single time block at this tiny shape)
    out = jax.block_until_ready(
        wav2vec2_seq_class_head(features, padding_mask, params))
    ref = _ref_forward(features, padding_mask, params)
    assert out.shape == (B, num_outs)
    assert jnp.allclose(out, ref, atol=1e-5, rtol=1e-5), (out, ref)

    # 2) masked, forced small time tile -> exercises the multi-step accumulator
    #    pipeline and the pl.when-gated ragged-tail path.
    out2 = jax.block_until_ready(
        wav2vec2_seq_class_head(features, padding_mask, params, t_tile=3))
    assert jnp.allclose(out2, ref, atol=1e-5, rtol=1e-5), (out2, ref)

    # 3) no padding mask (plain mean over time), tiled: no mask array at all.
    out3 = jax.block_until_ready(
        wav2vec2_seq_class_head(features, None, params, t_tile=3))
    ref3 = _ref_forward(features, None, params)
    assert jnp.allclose(out3, ref3, atol=1e-5, rtol=1e-5), (out3, ref3)

    # 4) bf16 features (half the HBM traffic; accumulate stays f32).
    feats_bf16 = features.astype(jnp.bfloat16)
    out4 = jax.block_until_ready(
        wav2vec2_seq_class_head(feats_bf16, padding_mask, params, t_tile=3))
    ref4 = _ref_forward(feats_bf16, padding_mask, params)
    assert jnp.allclose(out4, ref4, atol=2e-2, rtol=2e-2), (out4, ref4)

    print("KERNEL_OK")
</pallas_src>

<mosaic_0001>
module attributes {stable_mosaic.version = 11 : i64} {
  func.func @kernel(%arg0: i32, %arg1: i32, %arg2: memref<8x2x32xf32, #tpu.memory_space<vmem>>, %arg3: memref<8x2x1xf32, #tpu.memory_space<vmem>>, %arg4: memref<2x1xf32, #tpu.memory_space<vmem>>, %arg5: memref<32x8xf32, #tpu.memory_space<vmem>>, %arg6: memref<1x8xf32, #tpu.memory_space<vmem>>, %arg7: memref<2x8xf32, #tpu.memory_space<vmem>>, %arg8: memref<2x32xf32, #tpu.memory_space<vmem>>) attributes {dimension_semantics = [#tpu.dimension_semantics<parallel>, #tpu.dimension_semantics<arbitrary>], iteration_bounds = array<i64: 1, 1>, scalar_prefetch = 0 : i64, scratch_operands = 1 : i64, tpu.core_type = #tpu.core_type<tc>, window_params = [{transform_indices = @transform_0, window_bounds = array<i64: 8, 2, 32>}, {transform_indices = @transform_1, window_bounds = array<i64: 8, 2, 1>}, {transform_indices = @transform_2, window_bounds = array<i64: 2, 1>}, {pipeline_mode = #tpu.pipeline_mode<synchronous>, transform_indices = @transform_3, window_bounds = array<i64: 32, 8>}, {pipeline_mode = #tpu.pipeline_mode<synchronous>, transform_indices = @transform_4, window_bounds = array<i64: 1, 8>}, {transform_indices = @transform_5, window_bounds = array<i64: 2, 8>}]} {
    %c0_i32 = arith.constant 0 : i32
    %0 = arith.cmpi eq, %arg1, %c0_i32 : i32
    %1 = arith.extui %0 : i1 to i32
    %c0_i32_0 = arith.constant 0 : i32
    %2 = arith.cmpi ne, %1, %c0_i32_0 : i32
    scf.if %2 {
      %cst = arith.constant 0.000000e+00 : f32
      %80 = vector.broadcast %cst : f32 to vector<2x32xf32>
      %c0_39 = arith.constant 0 : index
      %c0_40 = arith.constant 0 : index
      %81 = vector.load %arg8[%c0_39, %c0_40] : memref<2x32xf32, #tpu.memory_space<vmem>>, vector<2x32xf32>
      tpu.vector_store %arg8[%c0_39, %c0_40], %80 {strides = array<i32>} : memref<2x32xf32, #tpu.memory_space<vmem>>, vector<2x32xf32>,
    } else {
    }
    %c0 = arith.constant 0 : index
    %c0_1 = arith.constant 0 : index
    %3 = vector.load %arg8[%c0, %c0_1] : memref<2x32xf32, #tpu.memory_space<vmem>>, vector<2x32xf32>
    %c0_i32_2 = arith.constant 0 : i32
    %4 = arith.index_cast %c0_i32_2 : i32 to index
    %c0_3 = arith.constant 0 : index
    %c0_4 = arith.constant 0 : index
    %5 = vector.load %arg2[%4, %c0_3, %c0_4] : memref<8x2x32xf32, #tpu.memory_space<vmem>>, vector<1x2x32xf32>
    %6 = vector.shape_cast %5 : vector<1x2x32xf32> to vector<2x32xf32>
    %7 = arith.index_cast %c0_i32_2 : i32 to index
    %c0_5 = arith.constant 0 : index
    %c0_6 = arith.constant 0 : index
    %8 = vector.load %arg3[%7, %c0_5, %c0_6] : memref<8x2x1xf32, #tpu.memory_space<vmem>>, vector<1x2x1xf32>
    %9 = vector.shape_cast %8 : vector<1x2x1xf32> to vector<2x1xf32>
    %10 = vector.broadcast %9 : vector<2x1xf32> to vector<2x32xf32>
    %11 = arith.mulf %6, %10 : vector<2x32xf32>
    %12 = arith.addf %3, %11 : vector<2x32xf32>
    %c1_i32 = arith.constant 1 : i32
    %13 = arith.index_cast %c1_i32 : i32 to index
    %c0_7 = arith.constant 0 : index
    %c0_8 = arith.constant 0 : index
    %14 = vector.load %arg2[%13, %c0_7, %c0_8] : memref<8x2x32xf32, #tpu.memory_space<vmem>>, vector<1x2x32xf32>
    %15 = vector.shape_cast %14 : vector<1x2x32xf32> to vector<2x32xf32>
    %16 = arith.index_cast %c1_i32 : i32 to index
    %c0_9 = arith.constant 0 : index
    %c0_10 = arith.constant 0 : index
    %17 = vector.load %arg3[%16, %c0_9, %c0_10] : memref<8x2x1xf32, #tpu.memory_space<vmem>>, vector<1x2x1xf32>
    %18 = vector.shape_cast %17 : vector<1x2x1xf32> to vector<2x1xf32>
    %19 = vector.broadcast %18 : vector<2x1xf32> to vector<2x32xf32>
    %20 = arith.mulf %15, %19 : vector<2x32xf32>
    %21 = arith.addf %12, %20 : vector<2x32xf32>
    %c2_i32 = arith.constant 2 : i32
    %22 = arith.index_cast %c2_i32 : i32 to index
    %c0_11 = arith.constant 0 : index
    %c0_12 = arith.constant 0 : index
    %23 = vector.load %arg2[%22, %c0_11, %c0_12] : memref<8x2x32xf32, #tpu.memory_space<vmem>>, vector<1x2x32xf32>
    %24 = vector.shape_cast %23 : vector<1x2x32xf32> to vector<2x32xf32>
    %25 = arith.index_cast %c2_i32 : i32 to index
    %c0_13 = arith.constant 0 : index
    %c0_14 = arith.constant 0 : index
    %26 = vector.load %arg3[%25, %c0_13, %c0_14] : memref<8x2x1xf32, #tpu.memory_space<vmem>>, vector<1x2x1xf32>
    %27 = vector.shape_cast %26 : vector<1x2x1xf32> to vector<2x1xf32>
    %28 = vector.broadcast %27 : vector<2x1xf32> to vector<2x32xf32>
    %29 = arith.mulf %24, %28 : vector<2x32xf32>
    %30 = arith.addf %21, %29 : vector<2x32xf32>
    %c3_i32 = arith.constant 3 : i32
    %31 = arith.index_cast %c3_i32 : i32 to index
    %c0_15 = arith.constant 0 : index
    %c0_16 = arith.constant 0 : index
    %32 = vector.load %arg2[%31, %c0_15, %c0_16] : memref<8x2x32xf32, #tpu.memory_space<vmem>>, vector<1x2x32xf32>
    %33 = vector.shape_cast %32 : vector<1x2x32xf32> to vector<2x32xf32>
    %34 = arith.index_cast %c3_i32 : i32 to index
    %c0_17 = arith.constant 0 : index
    %c0_18 = arith.constant 0 : index
    %35 = vector.load %arg3[%34, %c0_17, %c0_18] : memref<8x2x1xf32, #tpu.memory_space<vmem>>, vector<1x2x1xf32>
    %36 = vector.shape_cast %35 : vector<1x2x1xf32> to vector<2x1xf32>
    %37 = vector.broadcast %36 : vector<2x1xf32> to vector<2x32xf32>
    %38 = arith.mulf %33, %37 : vector<2x32xf32>
    %39 = arith.addf %30, %38 : vector<2x32xf32>
    %c4_i32 = arith.constant 4 : i32
    %40 = arith.index_cast %c4_i32 : i32 to index
    %c0_19 = arith.constant 0 : index
    %c0_20 = arith.constant 0 : index
    %41 = vector.load %arg2[%40, %c0_19, %c0_20] : memref<8x2x32xf32, #tpu.memory_space<vmem>>, vector<1x2x32xf32>
    %42 = vector.shape_cast %41 : vector<1x2x32xf32> to vector<2x32xf32>
    %43 = arith.index_cast %c4_i32 : i32 to index
    %c0_21 = arith.constant 0 : index
    %c0_22 = arith.constant 0 : index
    %44 = vector.load %arg3[%43, %c0_21, %c0_22] : memref<8x2x1xf32, #tpu.memory_space<vmem>>, vector<1x2x1xf32>
    %45 = vector.shape_cast %44 : vector<1x2x1xf32> to vector<2x1xf32>
    %46 = vector.broadcast %45 : vector<2x1xf32> to vector<2x32xf32>
    %47 = arith.mulf %42, %46 : vector<2x32xf32>
    %48 = arith.addf %39, %47 : vector<2x32xf32>
    %c5_i32 = arith.constant 5 : i32
    %49 = arith.index_cast %c5_i32 : i32 to index
    %c0_23 = arith.constant 0 : index
    %c0_24 = arith.constant 0 : index
    %50 = vector.load %arg2[%49, %c0_23, %c0_24] : memref<8x2x32xf32, #tpu.memory_space<vmem>>, vector<1x2x32xf32>
    %51 = vector.shape_cast %50 : vector<1x2x32xf32> to vector<2x32xf32>
    %52 = arith.index_cast %c5_i32 : i32 to index
    %c0_25 = arith.constant 0 : index
    %c0_26 = arith.constant 0 : index
    %53 = vector.load %arg3[%52, %c0_25, %c0_26] : memref<8x2x1xf32, #tpu.memory_space<vmem>>, vector<1x2x1xf32>
    %54 = vector.shape_cast %53 : vector<1x2x1xf32> to vector<2x1xf32>
    %55 = vector.broadcast %54 : vector<2x1xf32> to vector<2x32xf32>
    %56 = arith.mulf %51, %55 : vector<2x32xf32>
    %57 = arith.addf %48, %56 : vector<2x32xf32>
    %c6_i32 = arith.constant 6 : i32
    %58 = arith.index_cast %c6_i32 : i32 to index
    %c0_27 = arith.constant 0 : index
    %c0_28 = arith.constant 0 : index
    %59 = vector.load %arg2[%58, %c0_27, %c0_28] : memref<8x2x32xf32, #tpu.memory_space<vmem>>, vector<1x2x32xf32>
    %60 = vector.shape_cast %59 : vector<1x2x32xf32> to vector<2x32xf32>
    %61 = arith.index_cast %c6_i32 : i32 to index
    %c0_29 = arith.constant 0 : index
    %c0_30 = arith.constant 0 : index
    %62 = vector.load %arg3[%61, %c0_29, %c0_30] : memref<8x2x1xf32, #tpu.memory_space<vmem>>, vector<1x2x1xf32>
    %63 = vector.shape_cast %62 : vector<1x2x1xf32> to vector<2x1xf32>
    %64 = vector.broadcast %63 : vector<2x1xf32> to vector<2x32xf32>
    %65 = arith.mulf %60, %64 : vector<2x32xf32>
    %66 = arith.addf %57, %65 : vector<2x32xf32>
    %c7_i32 = arith.constant 7 : i32
    %67 = arith.index_cast %c7_i32 : i32 to index
    %c0_31 = arith.constant 0 : index
    %c0_32 = arith.constant 0 : index
    %68 = vector.load %arg2[%67, %c0_31, %c0_32] : memref<8x2x32xf32, #tpu.memory_space<vmem>>, vector<1x2x32xf32>
    %69 = vector.shape_cast %68 : vector<1x2x32xf32> to vector<2x32xf32>
    %70 = arith.index_cast %c7_i32 : i32 to index
    %c0_33 = arith.constant 0 : index
    %c0_34 = arith.constant 0 : index
    %71 = vector.load %arg3[%70, %c0_33, %c0_34] : memref<8x2x1xf32, #tpu.memory_space<vmem>>, vector<1x2x1xf32>
    %72 = vector.shape_cast %71 : vector<1x2x1xf32> to vector<2x1xf32>
    %73 = vector.broadcast %72 : vector<2x1xf32> to vector<2x32xf32>
    %74 = arith.mulf %69, %73 : vector<2x32xf32>
    %75 = arith.addf %66, %74 : vector<2x32xf32>
    %c8_i32 = arith.constant 8 : i32
    %c0_35 = arith.constant 0 : index
    %c0_36 = arith.constant 0 : index
    %76 = vector.load %arg8[%c0_35, %c0_36] : memref<2x32xf32, #tpu.memory_space<vmem>>, vector<2x32xf32>
    tpu.vector_store %arg8[%c0_35, %c0_36], %75 {strides = array<i32>} : memref<2x32xf32, #tpu.memory_space<vmem>>, vector<2x32xf32>,
    %c0_i32_37 = arith.constant 0 : i32
    %77 = arith.cmpi eq, %arg1, %c0_i32_37 : i32
    %78 = arith.extui %77 : i1 to i32
    %c0_i32_38 = arith.constant 0 : i32
    %79 = arith.cmpi ne, %78, %c0_i32_38 : i32
    scf.if %79 {
      %c0_39 = arith.constant 0 : index
      %c0_40 = arith.constant 0 : index
      %80 = vector.load %arg8[%c0_39, %c0_40] : memref<2x32xf32, #tpu.memory_space<vmem>>, vector<2x32xf32>
      %c0_41 = arith.constant 0 : index
      %c0_42 = arith.constant 0 : index
      %81 = vector.load %arg4[%c0_41, %c0_42] : memref<2x1xf32, #tpu.memory_space<vmem>>, vector<2x1xf32>
      %82 = vector.broadcast %81 : vector<2x1xf32> to vector<2x32xf32>
      %83 = arith.mulf %80, %82 : vector<2x32xf32>
      %c0_43 = arith.constant 0 : index
      %c0_44 = arith.constant 0 : index
      %84 = vector.load %arg5[%c0_43, %c0_44] : memref<32x8xf32, #tpu.memory_space<vmem>>, vector<32x8xf32>
      %cst = arith.constant dense<0.000000e+00> : vector<2x8xf32>
      %85 = tpu.matmul %83, %84, %cst {dimension_numbers = #tpu.dot_dimension_numbers<[1], [0], [0], [1], [0, 0, 1, 1], [], []>} : vector<2x32xf32>, vector<32x8xf32>, vector<2x8xf32> -> vector<2x8xf32>
      %c0_45 = arith.constant 0 : index
      %c0_46 = arith.constant 0 : index
      %86 = vector.load %arg6[%c0_45, %c0_46] : memref<1x8xf32, #tpu.memory_space<vmem>>, vector<1x8xf32>
      %87 = vector.broadcast %86 : vector<1x8xf32> to vector<2x8xf32>
      %88 = arith.addf %85, %87 : vector<2x8xf32>
      %c0_47 = arith.constant 0 : index
      %c0_48 = arith.constant 0 : index
      %89 = vector.load %arg7[%c0_47, %c0_48] : memref<2x8xf32, #tpu.memory_space<vmem>>, vector<2x8xf32>
      tpu.vector_store %arg7[%c0_47, %c0_48], %88 {strides = array<i32>} : memref<2x8xf32, #tpu.memory_space<vmem>>, vector<2x8xf32>,
    } else {
    }
    return
  }
  func.func @transform_0(%arg0: i32, %arg1: i32) -> (i32, i32, i32) {
    %c0_i32 = arith.constant 0 : i32
    %c0_i32_0 = arith.constant 0 : i32
    return %arg1, %arg0, %c0_i32 : i32, i32, i32
  }
  func.func @transform_1(%arg0: i32, %arg1: i32) -> (i32, i32, i32) {
    %c0_i32 = arith.constant 0 : i32
    %c0_i32_0 = arith.constant 0 : i32
    return %arg1, %arg0, %c0_i32 : i32, i32, i32
  }
  func.func @transform_2(%arg0: i32, %arg1: i32) -> (i32, i32) {
    %c0_i32 = arith.constant 0 : i32
    %c0_i32_0 = arith.constant 0 : i32
    return %arg0, %c0_i32 : i32, i32
  }
  func.func @transform_3(%arg0: i32, %arg1: i32) -> (i32, i32) {
    %c0_i32 = arith.constant 0 : i32
    %c0_i32_0 = arith.constant 0 : i32
    %c0_i32_1 = arith.constant 0 : i32
    return %c0_i32, %c0_i32_0 : i32, i32
  }
  func.func @transform_4(%arg0: i32, %arg1: i32) -> (i32, i32) {
    %c0_i32 = arith.constant 0 : i32
    %c0_i32_0 = arith.constant 0 : i32
    %c0_i32_1 = arith.constant 0 : i32
    return %c0_i32, %c0_i32_0 : i32, i32
  }
  func.func @transform_5(%arg0: i32, %arg1: i32) -> (i32, i32) {
    %c0_i32 = arith.constant 0 : i32
    %c0_i32_0 = arith.constant 0 : i32
    return %arg0, %c0_i32 : i32, i32
  }
}

</mosaic_0001>

<bundles_post_ra>
// kernel: tpu_custom_call.1
= control target key start
LH: loop header
LB: loop body
LE: loop exit
PB: predicated region body
PF: predicated region fallthrough
CT: control target
= control target key end

     0   :  { %v288_v2 = vmov 0   ;;  %vm25_vm0 = vcmask 254976   ;;  %v289_v5 = vmov 0.0   ;;  %s393_s0 = inlined_call_operand.vmem [shape: f32[8,2,32], index: 0, kind: input, shape index: {}]   ;;  %s394_s1 = inlined_call_operand.vmem [shape: f32[8,2,1], index: 1, kind: input, shape index: {}]   ;;  %s395_s2 = inlined_call_operand.vmem [shape: f32[2,1], index: 2, kind: input, shape index: {}]   ;;  %s396_s3 = inlined_call_operand.vmem [shape: f32[32,8], index: 3, kind: input, shape index: {}]   ;;  %s397_s4 = inlined_call_operand.vmem [shape: f32[1,8], index: 4, kind: input, shape index: {}]   ;;  %s398_s5 = inlined_call_operand.hbm [shape: f32[2,8], index: 5, kind: output, shape index: {}]  }
   0x1   :  { %v231_v0 = vld [vmem:[%s394_s1 + $0x4] sm:$0x3]  ;;  %v29_v1 = vld [vmem:[%s394_s1] sm:$0x3]  ;;  %265 = vset.pattern.permute.xlu1 %v288_v2  ;;  %264 = vset.pattern.permute.xlu0 %v288_v2  ;;  %v233_v3 = vld [vmem:[%s394_s1 + $0x6] sm:$0x3] }
   0x2   :  { %54 = vperm.xlu1 %265, %v231_v0   ;;  %32 = vperm.xlu0 %264, %v29_v1   ;;  %v229_v4 = vld [vmem:[%s394_s1 + $0x2] sm:$0x3]  ;;  %26 = vst.msk [vmem:[#allocation2] sm:$0x3] %vm25_vm0, %v289_v5 }
   0x3   :  { %249 = vmatprep.subr.mxu0 %v289_v5 }
   0x4   :  { %10 = vsyncpa [#allocation4], 0  ;;  %v237_v6 = vld [vmem:[%s394_s1 + $0xa] sm:$0x3]  ;;  %v235_v7 = vld [vmem:[%s394_s1 + $0x8] sm:$0x3] }
   0x5   :  { %v241_v8 = vld [vmem:[%s394_s1 + $0xe] sm:$0x3]  ;;  %v239_v9 = vld [vmem:[%s394_s1 + $0xc] sm:$0x3]  ;;  %v120_v10 = vld [vmem:[%s395_s2] sm:$0x3] }
   0x6   :  { %65 = vperm.xlu1 %265, %v233_v3   ;;  %43 = vperm.xlu0 %264, %v229_v4   ;;  %v130_v11 = vld [vmem:[%s396_s3 + $0x18] sm:$0xff]  ;;  %v129_v12 = vld [vmem:[%s396_s3 + $0x10] sm:$0xff]  ;;  %v128_v13 = vld [vmem:[%s396_s3 + $0x8] sm:$0xff]  ;;  %vm290_vm1 = vmmov 0   ;;  %vm138_vm2 = vcmask 261120   ;;  %s291_s9 = smov [#allocation3]  }
   0x7   :  { %250 = vmatpush3.msra.mxu0 %v130_v11  ;;  %v127_v14 = vld [vmem:[%s396_s3] sm:$0xff]  ;;  %257 = vmatprep.mubr.msk.f32.mxu0 %vm290_vm1, %v289_v5  ;;  %v234_v30 = vld [vmem:[%s393_s0 + $0x8] sm:$0x3]  ;;  %v236_v34 = vld [vmem:[%s393_s0 + $0xa] sm:$0x3]  ;;  %s220_s10 = sshll.u32 %s291_s9, 4  ;;  %s221_s10 = int_to_ptr.vmem [resolvable:$true] %s220_s10 }
   0x8   :  { %251 = vmatprep.subr.mxu0 %v289_v5  ;;  %v28_v15 = vld [vmem:[%s393_s0] sm:$0x3]  ;;  %v228_v20 = vld [vmem:[%s393_s0 + $0x2] sm:$0x3]  ;;  %v230_v21 = vld [vmem:[%s393_s0 + $0x4] sm:$0x3]  ;;  %p271_p1 = scmp.lt.s32.totalorder %s221_s10, %s221_s10 }
   0x9   :  { %252 = vmatpush3.msra.mxu0 %v129_v12  ;;  %v27_v19 = vld [vmem:[#allocation2] sm:$0x3]  ;;  %v232_v26 = vld [vmem:[%s393_s0 + $0x6] sm:$0x3]  ;;  %v238_v37 = vld [vmem:[%s393_s0 + $0xc] sm:$0x3] }
   0xa   :  { %87 = vperm.xlu1 %265, %v237_v6   ;;  %76 = vperm.xlu0 %264, %v235_v7   ;;  %v240_v41 = vld [vmem:[%s393_s0 + $0xe] sm:$0x3]  ;;  %v242_v51 = vld [vmem:[%s397_s4] ss:$0 sm:$0xff]  ;;  %vm212_vm3 = vcmask 58368   ;;  %s266_s0 = scalar_lea.vmem %s221_s10, 32 }
   0xb   :  { %253 = vmatprep.subr.mxu0 %v289_v5  ;;  %p267_p0 = scmp.ne.s32.totalorder %s221_s10, %s266_s0  ;;  %p272_p2 = scmp.lt.s32.totalorder %s266_s0, %s266_s0 }
   0xc   :  { %254 = vmatpush3.msra.mxu0 %v128_v13 }
   0xd   :  { %255 = vmatprep.subr.mxu0 %v289_v5  ;;  %p273_p3 = por %p272_p2, %p271_p1 }
   0xe   :  { %109 = vperm.xlu1 %265, %v241_v8   ;;  %98 = vperm.xlu0 %264, %v239_v9  }
   0xf   :  { %256 = vmatpush3.msra.mxu0 %v127_v14  ;;  %p274_p4 = pnand %p273_p3, %p267_p0 }
  0x12   :  { %123 = vperm.xlu0 %264, %v120_v10  }
  0x7d   :  { %v55_v16 = vpop.permute.xlu1 %54  ;;  %v33_v17 = vpop.permute.xlu0 %32 }
  0x7e   :  { %v35_v18 = vmul.f32 %v33_v17, %v28_v15  ;;  %v57_v27 = vmul.f32 %v230_v21, %v55_v16 }
  0x80   :  { %v36_v24 = vadd.f32 %v35_v18, %v27_v19 }
  0x81   :  { %v66_v22 = vpop.permute.xlu1 %65  ;;  %v44_v23 = vpop.permute.xlu0 %43 }
  0x82   :  { %v46_v25 = vmul.f32 %v228_v20, %v44_v23  ;;  %v68_v32 = vmul.f32 %v232_v26, %v66_v22 }
  0x84   :  { %v47_v28 = vadd.f32 %v46_v25, %v36_v24 }
  0x85   :  { %v88_v29 = vpop.permute.xlu1 %87  ;;  %v77_v31 = vpop.permute.xlu0 %76 }
  0x86   :  { %v58_v33 = vadd.f32 %v57_v27, %v47_v28  ;;  %v79_v36 = vmul.f32 %v234_v30, %v77_v31  ;;  %v90_v39 = vmul.f32 %v236_v34, %v88_v29 }
  0x88   :  { %v69_v35 = vadd.f32 %v68_v32, %v58_v33 }
  0x89   :  { %v99_v38 = vpop.permute.xlu0 %98  ;;  %v110_v42 = vpop.permute.xlu1 %109 }
  0x8a   :  { %v80_v40 = vadd.f32 %v79_v36, %v69_v35  ;;  %v101_v44 = vmul.f32 %v238_v37, %v99_v38  ;;  %v112_v45 = vmul.f32 %v240_v41, %v110_v42 }
  0x8c   :  { %v91_v43 = vadd.f32 %v90_v39, %v80_v40 }
  0x8d   :  { %v124_v48 = vpop.permute.xlu0 %123 }
  0x8e   :  { %v102_v46 = vadd.f32 %v101_v44, %v91_v43 }
  0x90   :  { %v113_v47 = vadd.f32 %v112_v45, %v102_v46 }
  0x92   :  { %115 = vst.msk [vmem:[#allocation2] sm:$0x3] %vm25_vm0, %v113_v47 }
  0x99   :  { %v119_v49 = vld [vmem:[#allocation2] sm:$0x3] }
  0x9a   :  { %v126_v50 = vmul.f32 %v124_v48, %v119_v49 }
  0x9c   :  { %258 = vmatmul.mubr.msk.f32.vlgmr.msra.gmra.mxu0 %vm138_vm2, %v126_v50 }
 0x15c   :  { %v208_v52 = vpop.f32.mrf.mxu0 }
 0x15d   :  { %v209_v53 = vadd.f32 %v242_v51, %v208_v52 }
 0x15e   :  { %v259_v54 = vpop.f32.mrf.mxu0 }
 0x15f   :  { %213 = vst.msk [vmem:[#allocation3] sm:$0x3] %vm212_vm3, %v209_v53 }
 0x160   :  { %277 = shalt.err (!%p274_p4)
}
 0x161   :  { %223 = dma.vmem_to_hbm [thread:$0]  %s221_s10, 32, %s398_s5, [#allocation4]  }
 0x162   :  { %286 = dma.done.wait [#allocation4], 32  }
 0x163   :  { %287 = vsyncadd [#allocation4], 4294967264 }
 0x164   :  { %227 = vsyncpa [#allocation4], 1 }

</bundles_post_ra>
